<compile_context>
chip_gen: v6e
topology: v6e:2x2x1
jax: 0.10.0
libtpu: 0.0.40
codegen_flags: <defaults>
</compile_context>

<pallas_src>
import functools

import jax
import jax.numpy as jnp
from jax.experimental import pallas as pl
from jax.experimental.pallas import tpu as pltpu

FC_DIM = 128                       # hidden width of text_fc / numeric_fc
LANE = 128
SUBLANE = 8
BLOCK_BUDGET = 8 * 1024 * 1024     # target bytes for one streamed hid block


def _round_up(x, m):
    return (x + m - 1) // m * m


def hybrid_head_kernel(hid_ref, num_ref, w1_ref, w2_ref, b_ref, out_ref, acc_ref,
                       *, seq_len, s_tile, mask_tail):
    """One (B_tile, S_tile) grid step.

    S is the (last, "arbitrary") reduction axis: the per-batch-tile sequence
    sum accumulates into `acc_ref` ([b_tile, 8|1, H] f32 sublane-partial sums);
    the folded affine head runs once, at the last S step.  The mean's 1/S is
    pre-folded into w1 by the wrapper.
    """
    s = pl.program_id(1)
    last = pl.num_programs(1) - 1

    @pl.when(s == 0)
    def _():
        acc_ref[...] = jnp.zeros_like(acc_ref)

    def _partial_sum(x):
        # Pure vreg adds per step; the cross-sublane collapse happens once at
        # the end (last S step) instead of once per step.
        bt, st, h = x.shape
        if st % SUBLANE == 0:
            return x.reshape(bt, st // SUBLANE, SUBLANE, h).sum(axis=1)
        return x.sum(axis=1, keepdims=True)          # tiny-S fallback (st == S)

    x = hid_ref[...].astype(jnp.float32)              # [b_tile, s_tile, H]

    if mask_tail:
        # Ragged last S tile: positions >= seq_len hold unspecified data from
        # the edge-partial block -> zero them before accumulating.
        @pl.when(s != last)
        def _():
            acc_ref[...] += _partial_sum(x)

        @pl.when(s == last)
        def _():
            pos = s * s_tile + jax.lax.broadcasted_iota(jnp.int32, x.shape, 1)
            acc_ref[...] += _partial_sum(jnp.where(pos < seq_len, x, 0.0))
    else:
        acc_ref[...] += _partial_sum(x)

    @pl.when(s == last)
    def _():
        pooled = acc_ref[...].sum(axis=1)              # [b_tile, H] f32 (sum; 1/S in w1)
        logits = (jnp.dot(pooled, w1_ref[...], preferred_element_type=jnp.float32)
                  + jnp.dot(num_ref[...].astype(jnp.float32), w2_ref[...],
                            preferred_element_type=jnp.float32)
                  + b_ref[...])                        # [b_tile, L_pad]
        out_ref[...] = logits.astype(out_ref.dtype)


def hybrid_model_forward(last_hidden_state, numeric_input, params,
                         *, b_tile=None, s_tile=None):
    """HybridModel.forward downstream of the transformer, as one Pallas kernel."""
    B, S, H = last_hidden_state.shape
    Bn, F = numeric_input.shape
    assert Bn == B
    L = params["b_cls"].shape[-1]
    itemsize = jnp.dtype(last_hidden_state.dtype).itemsize

    # ---- tile sizing (no HBM-side padding of the [B,S,H] stream) -----------
    if b_tile is None:
        if B <= SUBLANE:
            b_tile = B                                  # block dim == full dim
        else:
            # Small batch tiles (<= 64, multiple of 8); >= 2 tiles so the
            # "parallel" B axis can span both v7x TensorCores.
            nb_target = max(pl.cdiv(B, 64), 2)
            b_tile = _round_up(pl.cdiv(B, nb_target), SUBLANE)
        # v5e guard: even the minimum (s_tile = 8) hid block must fit the budget.
        if b_tile > SUBLANE and b_tile * SUBLANE * H * itemsize > BLOCK_BUDGET:
            b_tile = SUBLANE
    nb = pl.cdiv(B, b_tile)

    if s_tile is None:
        # As large as the block budget allows: long contiguous DMA rows
        # (s_tile*H*itemsize per batch row) and few grid steps.
        s_tile = BLOCK_BUDGET // max(1, b_tile * H * itemsize)
    if s_tile < S:
        s_tile = max(SUBLANE, s_tile // SUBLANE * SUBLANE)
    s_tile = min(s_tile, S)
    ns = pl.cdiv(S, s_tile)
    mask_tail = (S % s_tile) != 0                       # ragged last S tile -> mask in-kernel
    acc_rows = SUBLANE if s_tile % SUBLANE == 0 else 1

    L_pad = _round_up(L, LANE)                          # lane-dense output block

    # ---- fold the purely-affine head into two small f32 matrices -----------
    # classifier(cat(text_fc(mean(h)), numeric_fc(x)))
    #   = mean(h) @ (Wt@Wc_top) + x @ (Wn@Wc_bot) + (bt@Wc_top + bn@Wc_bot + bc)
    # (the module has no activation between the fc layers and the classifier)
    f32 = jnp.float32
    wc_t = params["w_cls"][:FC_DIM].astype(f32)
    wc_n = params["w_cls"][FC_DIM:].astype(f32)
    w1 = (params["w_text"].astype(f32) @ wc_t) * (1.0 / S)   # mean's 1/S folded, in f32
    w2 = params["w_num"].astype(f32) @ wc_n
    b = (params["b_text"].astype(f32) @ wc_t
         + params["b_num"].astype(f32) @ wc_n
         + params["b_cls"].astype(f32))
    if L_pad != L:
        w1 = jnp.pad(w1, ((0, 0), (0, L_pad - L)))
        w2 = jnp.pad(w2, ((0, 0), (0, L_pad - L)))
        b = jnp.pad(b, (0, L_pad - L))
    b = b.reshape(1, L_pad)

    # ---- VMEM budget (v7x: 64 MiB physical / 32 MiB scoped default) --------
    hid_blk = b_tile * s_tile * H * itemsize
    acc_blk = b_tile * acc_rows * H * 4
    w_blk = (H + _round_up(F, SUBLANE) + SUBLANE) * L_pad * 4
    io_blk = b_tile * (L_pad + _round_up(F, LANE)) * 4
    vmem_limit = int(min(48 * 1024 * 1024,
                         2 * hid_blk + acc_blk + 2 * (w_blk + io_blk) + (8 << 20)))

    cost = pl.CostEstimate(
        flops=int(B * S * H + 2 * B * (H + F) * L_pad),
        transcendentals=0,
        bytes_accessed=int(last_hidden_state.size * itemsize
                           + numeric_input.size * jnp.dtype(numeric_input.dtype).itemsize
                           + (w1.size + w2.size + b.size) * 4
                           + B * L_pad * 4),
    )

    kernel = functools.partial(hybrid_head_kernel,
                               seq_len=S, s_tile=s_tile, mask_tail=mask_tail)

    out = pl.pallas_call(
        kernel,
        out_shape=jax.ShapeDtypeStruct((B, L_pad), jnp.float32),
        grid_spec=pltpu.PrefetchScalarGridSpec(
            num_scalar_prefetch=0,
            grid=(nb, ns),
            in_specs=[
                pl.BlockSpec((b_tile, s_tile, H), lambda i, j: (i, j, 0)),  # hid stream
                pl.BlockSpec((b_tile, F),         lambda i, j: (i, 0)),     # numeric
                pl.BlockSpec((H, L_pad),          lambda i, j: (0, 0)),     # folded text W
                pl.BlockSpec((F, L_pad),          lambda i, j: (0, 0)),     # folded numeric W
                pl.BlockSpec((1, L_pad),          lambda i, j: (0, 0)),     # folded bias
            ],
            out_specs=pl.BlockSpec((b_tile, L_pad), lambda i, j: (i, 0)),
            scratch_shapes=[pltpu.VMEM((b_tile, acc_rows, H), jnp.float32)],
        ),
        compiler_params=pltpu.CompilerParams(
            dimension_semantics=("parallel", "arbitrary"),
            vmem_limit_bytes=vmem_limit),
        cost_estimate=cost,
    )(last_hidden_state, numeric_input, w1, w2, b)

    return out[:, :L]


def init_params(key, hidden_size, num_numeric_features, num_labels):
    """Deterministic synthetic params (shapes match the nn.Linear layers)."""
    k1, k2, k3, k4, k5, k6 = jax.random.split(key, 6)
    scale_t = 1.0 / jnp.sqrt(hidden_size)
    scale_n = 1.0 / jnp.sqrt(num_numeric_features)
    scale_c = 1.0 / jnp.sqrt(2 * FC_DIM)
    return {
        # stored as [in, out] so forward does x @ W + b (== torch x @ W.T + b)
        "w_text": jax.random.uniform(k1, (hidden_size, FC_DIM), jnp.float32,
                                     -scale_t, scale_t),
        "b_text": jax.random.uniform(k2, (FC_DIM,), jnp.float32, -scale_t, scale_t),
        "w_num": jax.random.uniform(k3, (num_numeric_features, FC_DIM), jnp.float32,
                                    -scale_n, scale_n),
        "b_num": jax.random.uniform(k4, (FC_DIM,), jnp.float32, -scale_n, scale_n),
        "w_cls": jax.random.uniform(k5, (2 * FC_DIM, num_labels), jnp.float32,
                                    -scale_c, scale_c),
        "b_cls": jax.random.uniform(k6, (num_labels,), jnp.float32, -scale_c, scale_c),
    }


def _reference(last_hidden_state, numeric_input, params):
    """Pure-JAX f32 reference with the module's original (unfused) structure."""
    pooled = jnp.mean(last_hidden_state.astype(jnp.float32), axis=1)
    text_feat = pooled @ params["w_text"] + params["b_text"]
    num_feat = numeric_input.astype(jnp.float32) @ params["w_num"] + params["b_num"]
    return (jnp.concatenate([text_feat, num_feat], axis=1) @ params["w_cls"]
            + params["b_cls"])


if __name__ == "__main__":
    # Small, module-consistent shapes.
    B, S, H, F, L = 2, 8, 32, 6, 4

    key = jax.random.PRNGKey(0)
    k_hid, k_num, k_par, k_hid2, k_num2 = jax.random.split(key, 5)

    # Stand-in for transformer(**text_input).last_hidden_state
    last_hidden_state = jax.random.normal(k_hid, (B, S, H), jnp.float32)
    numeric_input = jax.random.normal(k_num, (B, F), jnp.float32)
    params = init_params(k_par, H, F, L)

    # 1) f32, auto tiling (single S block, whole-sequence sum in one step).
    logits = hybrid_model_forward(last_hidden_state, numeric_input, params)
    jax.block_until_ready(logits)
    ref = _reference(last_hidden_state, numeric_input, params)
    assert logits.shape == (B, L)
    assert jnp.allclose(logits, ref, atol=1e-4, rtol=1e-4)

    # 2) ragged shapes + forced tiling: B not a multiple of b_tile (partial B
    #    edge block, OOB rows dropped at writeback) and S not a multiple of
    #    s_tile (ragged last S tile masked in-kernel).  No HBM-side padding.
    B2, S2 = 20, 13
    hid2 = jax.random.normal(k_hid2, (B2, S2, H), jnp.float32)
    num2 = jax.random.normal(k_num2, (B2, F), jnp.float32)
    logits2 = hybrid_model_forward(hid2, num2, params, b_tile=16, s_tile=8)
    jax.block_until_ready(logits2)
    ref2 = _reference(hid2, num2, params)
    assert logits2.shape == (B2, L)
    assert jnp.allclose(logits2, ref2, atol=1e-4, rtol=1e-4)

    # 3) bf16 streaming path (inputs + params bf16; folding and accumulation
    #    stay f32 in the wrapper/kernel): halves HBM traffic on the dominant
    #    [B,S,H] stream at real sizes.
    bf16_params = {k: v.astype(jnp.bfloat16) for k, v in params.items()}
    logits_bf16 = hybrid_model_forward(last_hidden_state.astype(jnp.bfloat16),
                                       numeric_input.astype(jnp.bfloat16),
                                       bf16_params)
    jax.block_until_ready(logits_bf16)
    assert logits_bf16.shape == (B, L)
    assert jnp.allclose(logits_bf16, ref, atol=1e-1, rtol=1e-1)

    print("KERNEL_OK")
</pallas_src>

<mosaic_0001>
module attributes {stable_mosaic.version = 11 : i64} {
  func.func @hybrid_head_kernel(%arg0: i32, %arg1: i32, %arg2: memref<2x8x32xf32, #tpu.memory_space<vmem>>, %arg3: memref<2x6xf32, #tpu.memory_space<vmem>>, %arg4: memref<32x128xf32, #tpu.memory_space<vmem>>, %arg5: memref<6x128xf32, #tpu.memory_space<vmem>>, %arg6: memref<1x128xf32, #tpu.memory_space<vmem>>, %arg7: memref<2x128xf32, #tpu.memory_space<vmem>>, %arg8: memref<2x8x32xf32, #tpu.memory_space<vmem>>) attributes {dimension_semantics = [#tpu.dimension_semantics<parallel>, #tpu.dimension_semantics<arbitrary>], iteration_bounds = array<i64: 1, 1>, scalar_prefetch = 0 : i64, scratch_operands = 1 : i64, tpu.core_type = #tpu.core_type<tc>, window_params = [{transform_indices = @transform_0, window_bounds = array<i64: 2, 8, 32>}, {transform_indices = @transform_1, window_bounds = array<i64: 2, 6>}, {pipeline_mode = #tpu.pipeline_mode<synchronous>, transform_indices = @transform_2, window_bounds = array<i64: 32, 128>}, {pipeline_mode = #tpu.pipeline_mode<synchronous>, transform_indices = @transform_3, window_bounds = array<i64: 6, 128>}, {pipeline_mode = #tpu.pipeline_mode<synchronous>, transform_indices = @transform_4, window_bounds = array<i64: 1, 128>}, {transform_indices = @transform_5, window_bounds = array<i64: 2, 128>}]} {
    %c0_i32 = arith.constant 0 : i32
    %0 = arith.cmpi eq, %arg1, %c0_i32 : i32
    %1 = arith.extui %0 : i1 to i32
    %c0_i32_0 = arith.constant 0 : i32
    %2 = arith.cmpi ne, %1, %c0_i32_0 : i32
    scf.if %2 {
      %cst_11 = arith.constant 0.000000e+00 : f32
      %12 = vector.broadcast %cst_11 : f32 to vector<2x8x32xf32>
      %c0_12 = arith.constant 0 : index
      %c0_13 = arith.constant 0 : index
      %c0_14 = arith.constant 0 : index
      %13 = vector.load %arg8[%c0_12, %c0_13, %c0_14] : memref<2x8x32xf32, #tpu.memory_space<vmem>>, vector<2x8x32xf32>
      tpu.vector_store %arg8[%c0_12, %c0_13, %c0_14], %12 {strides = array<i32>} : memref<2x8x32xf32, #tpu.memory_space<vmem>>, vector<2x8x32xf32>,
    } else {
    }
    %c0 = arith.constant 0 : index
    %c0_1 = arith.constant 0 : index
    %c0_2 = arith.constant 0 : index
    %3 = vector.load %arg2[%c0, %c0_1, %c0_2] : memref<2x8x32xf32, #tpu.memory_space<vmem>>, vector<2x8x32xf32>
    %c0_3 = arith.constant 0 : index
    %c0_4 = arith.constant 0 : index
    %c0_5 = arith.constant 0 : index
    %4 = vector.load %arg8[%c0_3, %c0_4, %c0_5] : memref<2x8x32xf32, #tpu.memory_space<vmem>>, vector<2x8x32xf32>
    %5 = vector.shape_cast %3 : vector<2x8x32xf32> to vector<2x1x8x32xf32>
    %cst = arith.constant dense<0.000000e+00> : vector<2x8x32xf32>
    %6 = vector.multi_reduction <add>, %5, %cst [1] : vector<2x1x8x32xf32> to vector<2x8x32xf32>
    %7 = arith.addf %4, %6 : vector<2x8x32xf32>
    %c0_6 = arith.constant 0 : index
    %c0_7 = arith.constant 0 : index
    %c0_8 = arith.constant 0 : index
    %8 = vector.load %arg8[%c0_6, %c0_7, %c0_8] : memref<2x8x32xf32, #tpu.memory_space<vmem>>, vector<2x8x32xf32>
    tpu.vector_store %arg8[%c0_6, %c0_7, %c0_8], %7 {strides = array<i32>} : memref<2x8x32xf32, #tpu.memory_space<vmem>>, vector<2x8x32xf32>,
    %c0_i32_9 = arith.constant 0 : i32
    %9 = arith.cmpi eq, %arg1, %c0_i32_9 : i32
    %10 = arith.extui %9 : i1 to i32
    %c0_i32_10 = arith.constant 0 : i32
    %11 = arith.cmpi ne, %10, %c0_i32_10 : i32
    scf.if %11 {
      %c0_11 = arith.constant 0 : index
      %c0_12 = arith.constant 0 : index
      %c0_13 = arith.constant 0 : index
      %12 = vector.load %arg8[%c0_11, %c0_12, %c0_13] : memref<2x8x32xf32, #tpu.memory_space<vmem>>, vector<2x8x32xf32>
      %cst_14 = arith.constant dense<0.000000e+00> : vector<2x32xf32>
      %13 = vector.multi_reduction <add>, %12, %cst_14 [1] : vector<2x8x32xf32> to vector<2x32xf32>
      %c0_15 = arith.constant 0 : index
      %c0_16 = arith.constant 0 : index
      %14 = vector.load %arg4[%c0_15, %c0_16] : memref<32x128xf32, #tpu.memory_space<vmem>>, vector<32x128xf32>
      %cst_17 = arith.constant dense<0.000000e+00> : vector<2x128xf32>
      %15 = tpu.matmul %13, %14, %cst_17 {dimension_numbers = #tpu.dot_dimension_numbers<[1], [0], [0], [1], [0, 0, 1, 1], [], []>} : vector<2x32xf32>, vector<32x128xf32>, vector<2x128xf32> -> vector<2x128xf32>
      %c0_18 = arith.constant 0 : index
      %c0_19 = arith.constant 0 : index
      %16 = vector.load %arg3[%c0_18, %c0_19] : memref<2x6xf32, #tpu.memory_space<vmem>>, vector<2x6xf32>
      %c0_20 = arith.constant 0 : index
      %c0_21 = arith.constant 0 : index
      %17 = vector.load %arg5[%c0_20, %c0_21] : memref<6x128xf32, #tpu.memory_space<vmem>>, vector<6x128xf32>
      %cst_22 = arith.constant dense<0.000000e+00> : vector<2x128xf32>
      %18 = tpu.matmul %16, %17, %cst_22 {dimension_numbers = #tpu.dot_dimension_numbers<[1], [0], [0], [1], [0, 0, 1, 1], [], []>} : vector<2x6xf32>, vector<6x128xf32>, vector<2x128xf32> -> vector<2x128xf32>
      %19 = arith.addf %15, %18 : vector<2x128xf32>
      %c0_23 = arith.constant 0 : index
      %c0_24 = arith.constant 0 : index
      %20 = vector.load %arg6[%c0_23, %c0_24] : memref<1x128xf32, #tpu.memory_space<vmem>>, vector<1x128xf32>
      %21 = vector.broadcast %20 : vector<1x128xf32> to vector<2x128xf32>
      %22 = arith.addf %19, %21 : vector<2x128xf32>
      %c0_25 = arith.constant 0 : index
      %c0_26 = arith.constant 0 : index
      %23 = vector.load %arg7[%c0_25, %c0_26] : memref<2x128xf32, #tpu.memory_space<vmem>>, vector<2x128xf32>
      tpu.vector_store %arg7[%c0_25, %c0_26], %22 {strides = array<i32>} : memref<2x128xf32, #tpu.memory_space<vmem>>, vector<2x128xf32>,
    } else {
    }
    return
  }
  func.func @transform_0(%arg0: i32, %arg1: i32) -> (i32, i32, i32) {
    %c0_i32 = arith.constant 0 : i32
    %c0_i32_0 = arith.constant 0 : i32
    return %arg0, %arg1, %c0_i32 : i32, i32, i32
  }
  func.func @transform_1(%arg0: i32, %arg1: i32) -> (i32, i32) {
    %c0_i32 = arith.constant 0 : i32
    %c0_i32_0 = arith.constant 0 : i32
    return %arg0, %c0_i32 : i32, i32
  }
  func.func @transform_2(%arg0: i32, %arg1: i32) -> (i32, i32) {
    %c0_i32 = arith.constant 0 : i32
    %c0_i32_0 = arith.constant 0 : i32
    %c0_i32_1 = arith.constant 0 : i32
    return %c0_i32, %c0_i32_0 : i32, i32
  }
  func.func @transform_3(%arg0: i32, %arg1: i32) -> (i32, i32) {
    %c0_i32 = arith.constant 0 : i32
    %c0_i32_0 = arith.constant 0 : i32
    %c0_i32_1 = arith.constant 0 : i32
    return %c0_i32, %c0_i32_0 : i32, i32
  }
  func.func @transform_4(%arg0: i32, %arg1: i32) -> (i32, i32) {
    %c0_i32 = arith.constant 0 : i32
    %c0_i32_0 = arith.constant 0 : i32
    %c0_i32_1 = arith.constant 0 : i32
    return %c0_i32, %c0_i32_0 : i32, i32
  }
  func.func @transform_5(%arg0: i32, %arg1: i32) -> (i32, i32) {
    %c0_i32 = arith.constant 0 : i32
    %c0_i32_0 = arith.constant 0 : i32
    return %arg0, %c0_i32 : i32, i32
  }
}

</mosaic_0001>

<bundles_post_ra>
// kernel: tpu_custom_call.1
= control target key start
LH: loop header
LB: loop body
LE: loop exit
PB: predicated region body
PF: predicated region fallthrough
CT: control target
= control target key end

     0   :  { %10 = vsyncpa [#allocation4], 0  ;;  %s503_s0 = inlined_call_operand.hbm [shape: f32[2,8,32], index: 0, kind: input, shape index: {}]   ;;  %s504_s1 = inlined_call_operand.hbm [shape: f32[2,6], index: 1, kind: input, shape index: {}]   ;;  %s505_s2 = inlined_call_operand.hbm [shape: f32[32,128], index: 2, kind: input, shape index: {}]   ;;  %s506_s3 = inlined_call_operand.hbm [shape: f32[6,128], index: 3, kind: input, shape index: {}]   ;;  %s507_s4 = inlined_call_operand.vmem [shape: f32[1,128], index: 4, kind: input, shape index: {}]   ;;  %s508_s5 = inlined_call_operand.hbm [shape: f32[2,128], index: 5, kind: output, shape index: {}]  }
   0x1   :  { %11 = vsyncpa [#allocation7], 0 }
   0x2   :  { %12 = vsyncpa [#allocation10], 0 }
   0x3   :  { %13 = vsyncpa [#allocation5], 0  ;;  %s439_s18 = smov [#allocation6]   ;;  %s440_s20 = smov [#allocation3]  }
   0x4   :  { %s32_s19 = sshll.u32 %s439_s18, 4  ;;  %s19_s21 = sshll.u32 %s440_s20, 4  ;;  %s33_s19 = int_to_ptr.vmem [resolvable:$true] %s32_s19  ;;  %s20_s21 = int_to_ptr.vmem [resolvable:$true] %s19_s21 }
   0x5   :  { %s339_s22 = scalar_lea.vmem %s33_s19, 32  ;;  %p344_p1 = scmp.lt.s32.totalorder %s33_s19, %s33_s19 }
   0x6   :  { %p340_p0 = scmp.ne.s32.totalorder %s33_s19, %s339_s22  ;;  %p345_p2 = scmp.lt.s32.totalorder %s339_s22, %s339_s22 }
   0x8   :  { %p346_p3 = por %p345_p2, %p344_p1 }
   0xa   :  { %p347_p4 = pnand %p346_p3, %p340_p0 }
   0xc   :  { %350 = shalt.err (!%p347_p4)
}
   0xd   :  { %35 = dma.hbm_to_vmem [thread:$0]  %s504_s1, 32, %s33_s19, [#allocation7]  }
   0xe   :  { %s359_s25 = scalar_lea.vmem %s20_s21, 256  ;;  %p364_p6 = scmp.lt.s32.totalorder %s20_s21, %s20_s21 }
   0xf   :  { %p360_p5 = scmp.ne.s32.totalorder %s20_s21, %s359_s25  ;;  %p365_p7 = scmp.lt.s32.totalorder %s359_s25, %s359_s25 }
  0x11   :  { %p366_p8 = por %p365_p7, %p364_p6 }
  0x13   :  { %p367_p9 = pnand %p366_p8, %p360_p5 }
  0x15   :  { %370 = shalt.err (!%p367_p9)
}
  0x16   :  { %s441_s26 = smov 128   ;;  %s442_s27 = smov 8  }
  0x17   :  { %25 = dma.hbm_to_vmem [thread:$0]  %s503_s0, 256, %s20_s21, [#allocation4], %s441_s26, %s441_s26, %s442_s27  }
  0x18   :  { %s443_s30 = smov [#allocation8]   ;;  %s444_s7 = smov [#allocation9]  }
  0x19   :  { %s41_s6 = sshll.u32 %s443_s30, 4  ;;  %s54_s8 = sshll.u32 %s444_s7, 4  ;;  %s42_s6 = int_to_ptr.vmem [resolvable:$true] %s41_s6  ;;  %s55_s8 = int_to_ptr.vmem [resolvable:$true] %s54_s8 }
  0x1a   :  { %s379_s1 = scalar_lea.vmem %s42_s6, 512  ;;  %p384_p11 = scmp.lt.s32.totalorder %s42_s6, %s42_s6 }
  0x1b   :  { %p380_p10 = scmp.ne.s32.totalorder %s42_s6, %s379_s1  ;;  %p385_p12 = scmp.lt.s32.totalorder %s379_s1, %s379_s1 }
  0x1d   :  { %p386_p13 = por %p385_p12, %p384_p11 }
  0x1f   :  { %p387_p0 = pnand %p386_p13, %p380_p10 }
  0x21   :  { %390 = shalt.err (!%p387_p0)
}
  0x22   :  { %47 = dma.hbm_to_vmem [thread:$0]  %s505_s2, 512, %s42_s6, [#allocation7], %s441_s26, %s441_s26, %s442_s27  }
  0x23   :  { %s399_s11 = scalar_lea.vmem %s55_s8, 128  ;;  %p404_p2 = scmp.lt.s32.totalorder %s55_s8, %s55_s8 }
  0x24   :  { %p400_p1 = scmp.ne.s32.totalorder %s55_s8, %s399_s11  ;;  %p405_p3 = scmp.lt.s32.totalorder %s399_s11, %s399_s11 }
  0x26   :  { %p406_p4 = por %p405_p3, %p404_p2 }
  0x28   :  { %p407_p5 = pnand %p406_p4, %p400_p1 }
  0x2a   :  { %410 = shalt.err (!%p407_p5)
}
  0x2b   :  { %57 = dma.hbm_to_vmem [thread:$0]  %s506_s3, 128, %s55_s8, [#allocation10]  }
  0x2c   :  { %431 = dma.done.wait [#allocation4], 256  }
  0x2d   :  { %432 = vsyncadd [#allocation4], 4294967040 }
  0x2e   :  { %433 = dma.done.wait [#allocation7], 544  }
  0x2f   :  { %434 = vsyncadd [#allocation7], 4294966752 }
  0x30   :  { %435 = dma.done.wait [#allocation10], 128  }
  0x31   :  { %436 = vsyncadd [#allocation10], 4294967168  ;;  %v445_v0 = vmov 0.0   ;;  %vm76_vm0 = vcmask 261120   ;;  %vm446_vm1 = vmmov 0   ;;  %vm119_vm2 = vcmask 1045504  }
  0x32   :  { %311 = vmatprep.subr.mxu1 %v445_v0  ;;  %306 = vmatprep.subr.mxu0 %v445_v0  ;;  %77 = vst.msk [vmem:[#allocation2] sm:$0xff] %vm76_vm0, %v445_v0  ;;  %78 = vst.msk [vmem:[#allocation2 + $0x8] sm:$0xff] %vm76_vm0, %v445_v0  ;;  %vm115_vm3 = vcmask 48128   ;;  %v112_v1 = vld [vmem:[#allocation8 + $0x18] sm:$0xff]  ;;  %v111_v2 = vld [vmem:[#allocation8 + $0x10] sm:$0xff]  ;;  %vm195_vm4 = vcmask 1041409  }
  0x33   :  { %308 = vmatprep.mubr.msk.f32.mxu0 %vm446_vm1, %v445_v0  ;;  %319 = vmatprep.mubr.msk.f32.mxu1 %vm446_vm1, %v445_v0  ;;  %v114_v3 = vld [vmem:[#allocation9] sm:$0x3f]  ;;  %v110_v4 = vld [vmem:[#allocation8 + $0x8] sm:$0xff]  ;;  %v113_v5 = vld [vmem:[#allocation6] sm:$0x3]  ;;  %s447_s13 = smov [#allocation11]  }
  0x34   :  { %312 = vmatpush3.msra.mxu1 %v112_v1  ;;  %307 = vmatpush3.msk.msra.mxu0 %vm119_vm2, %v114_v3  ;;  %v79_v6 = vld [vmem:[#allocation3] sm:$0xff]  ;;  %v80_v7 = vld [vmem:[#allocation3 + $0x8] sm:$0xff]  ;;  %v109_v11 = vld [vmem:[#allocation8] sm:$0xff]  ;;  %s284_s14 = sshll.u32 %s447_s13, 4  ;;  %s285_s14 = int_to_ptr.vmem [resolvable:$true] %s284_s14 }
  0x35   :  { %313 = vmatprep.subr.mxu1 %v445_v0  ;;  %309 = vmatmul.mubr.msk.f32.vlgmr.msra.gmra.mxu0 %vm115_vm3, %v113_v5  ;;  %v298_v33 = vld [vmem:[%s507_s4] ss:$0 sm:$0xff]  ;;  %s411_s15 = scalar_lea.vmem %s285_s14, 32  ;;  %p416_p7 = scmp.lt.s32.totalorder %s285_s14, %s285_s14 }
  0x36   :  { %314 = vmatpush3.msra.mxu1 %v111_v2  ;;  %p412_p6 = scmp.ne.s32.totalorder %s285_s14, %s411_s15  ;;  %p417_p8 = scmp.lt.s32.totalorder %s411_s15, %s411_s15 }
  0x37   :  { %315 = vmatprep.subr.mxu1 %v445_v0 }
  0x38   :  { %316 = vmatpush3.msra.mxu1 %v110_v4  ;;  %p418_p9 = por %p417_p8, %p416_p7 }
  0x39   :  { %v81_v8 = vld [vmem:[#allocation2] sm:$0xff]  ;;  %v82_v9 = vld [vmem:[#allocation2 + $0x8] sm:$0xff]  ;;  %317 = vmatprep.subr.mxu1 %v445_v0 }
  0x3a   :  { %v85_v10 = vadd.f32 %v81_v8, %v79_v6  ;;  %v86_v12 = vadd.f32 %v82_v9, %v80_v7  ;;  %318 = vmatpush3.msra.mxu1 %v109_v11  ;;  %p419_p10 = pnand %p418_p9, %p412_p6 }
  0x3c   :  { %88 = vst.msk [vmem:[#allocation2] sm:$0xff] %vm76_vm0, %v85_v10  ;;  %89 = vst.msk [vmem:[#allocation2 + $0x8] sm:$0xff] %vm76_vm0, %v86_v12 }
  0x43   :  { %v93_v13 = vld [vmem:[#allocation2] sm:$0xff]  ;;  %v94_v14 = vld [vmem:[#allocation2 + $0x8] sm:$0xff] }
  0x44   :  { %v95_v15 = vsel %vm76_vm0, %v93_v13, 0.0  ;;  %v102_v17 = vsel %vm76_vm0, %v94_v14, 0.0 }
  0x45   :  { %v96_v16 = vrot.slane %v95_v15, 4  ;;  %v103_v18 = vrot.slane %v102_v17, 4 }
  0x47   :  { %v97_v19 = vadd.f32 %v96_v16, %v95_v15  ;;  %v104_v20 = vadd.f32 %v103_v18, %v102_v17 }
  0x49   :  { %v98_v21 = vrot.slane %v97_v19, 2  ;;  %v105_v22 = vrot.slane %v104_v20, 2 }
  0x4b   :  { %v99_v23 = vadd.f32 %v98_v21, %v97_v19  ;;  %v106_v24 = vadd.f32 %v105_v22, %v104_v20 }
  0x4d   :  { %v100_v25 = vrot.slane %v99_v23, 1  ;;  %v107_v26 = vrot.slane %v106_v24, 1 }
  0x4f   :  { %v101_v27 = vadd.f32 %v100_v25, %v99_v23  ;;  %v108_v28 = vadd.f32 %v107_v26, %v106_v24 }
  0x51   :  { %v196_v29 = vsel %vm195_vm4, %v108_v28, %v101_v27 }
  0x52   :  { %320 = vmatmul.mubr.msk.f32.vlgmr.msra.gmra.mxu1 %vm76_vm0, %v196_v29 }
  0xf5   :  { %v189_v30 = vpop.f32.mrf.mxu0 }
  0xf7   :  { %v310_v31 = vpop.f32.mrf.mxu0 }
 0x112   :  { %v265_v32 = vpop.f32.mrf.mxu1 }
 0x113   :  { %v266_v34 = vadd.f32 %v265_v32, %v189_v30 }
 0x114   :  { %v321_v35 = vpop.f32.mrf.mxu1 }
 0x115   :  { %v276_v36 = vadd.f32 %v298_v33, %v266_v34 }
 0x117   :  { %277 = vst [vmem:[#allocation11] sm:$0x3] %v276_v36 }
 0x118   :  { %422 = shalt.err (!%p419_p10)
}
 0x119   :  { %287 = dma.vmem_to_hbm [thread:$0]  %s285_s14, 32, %s508_s5, [#allocation5]  }
 0x11a   :  { %437 = dma.done.wait [#allocation5], 32  }
 0x11b   :  { %438 = vsyncadd [#allocation5], 4294967264 }
 0x11c   :  { %291 = vsyncpa [#allocation4], 1 }
 0x11d   :  { %292 = vsyncpa [#allocation7], 1 }
 0x11e   :  { %293 = vsyncpa [#allocation10], 1 }
 0x11f   :  { %294 = vsyncpa [#allocation5], 1 }

</bundles_post_ra>
